<compile_context>
chip_gen: v7x
topology: tpu7x:2x2x1
jax: 0.10.0
libtpu: 0.0.40
codegen_flags: <defaults>
</compile_context>

<pallas_src>
import functools

import jax
import jax.numpy as jnp
from jax.experimental import pallas as pl
from jax.experimental.pallas import tpu as pltpu

EPS = 1e-5
EXPANSION = 4


def _tpu_vmem_capacity():
    try:
        return int(pltpu.get_tpu_info().vmem_capacity_bytes)
    except Exception:
        return 64 * 1024 * 1024        # conservative fallback (v7x per-core)


_VMEM_CAP = _tpu_vmem_capacity()
VMEM_LIMIT = (_VMEM_CAP * 3) // 4      # ~48 MiB on v7x, ~96 MiB on v5e/v6e
TM_PREF = 1024 if _VMEM_CAP >= 100 * 1024 * 1024 else 512


def _choose_tile(dim, pref):
    """Largest multiple-of-8 tile <= pref that divides dim, else the full dim.
    # TODO(synk): masked tail tiles for dims with no multiple-of-8 divisor."""
    for t in (pref, 2048, 1024, 512, 256, 128, 64, 32, 16, 8):
        if t <= pref and t % 8 == 0 and dim % t == 0:
            return t
    return dim


# ----------------------------------------------------------------------------
# Kernel 1: fused (optional BN+ReLU prologue) 1x1-conv matmul + BN-stats
# epilogue.  Weight is fully VMEM-resident (no K grid axis, no scratch):
#   A (M, K)  x  B (K, N) bf16  ->  Z (M, N) out_dtype, stats (nm, 2, N) f32
# Grid: (M tiles,) all "parallel".
# ----------------------------------------------------------------------------
def _mm_bn_kernel(*refs, prologue):
    if prologue:
        a_ref, scale_ref, shift_ref, b_ref, z_ref, stats_ref = refs
    else:
        a_ref, b_ref, z_ref, stats_ref = refs
    a = a_ref[...]
    if prologue:  # previous layer's BatchNorm (as affine) + ReLU
        a = jnp.maximum(a.astype(jnp.float32) * scale_ref[...] + shift_ref[...],
                        0.0)
    z = jnp.dot(a.astype(jnp.bfloat16), b_ref[...],
                preferred_element_type=jnp.float32)
    z_ref[...] = z.astype(z_ref.dtype)         # bf16 intermediates on store
    stats_ref[0] = jnp.concatenate(
        [jnp.sum(z, axis=0, keepdims=True),
         jnp.sum(z * z, axis=0, keepdims=True)], axis=0)


def matmul_bn_stats(a, b_bf16, scale=None, shift=None, *,
                    out_dtype=jnp.float32, tm_pref=None):
    M, K = a.shape
    Kb, N = b_bf16.shape
    assert K == Kb
    # Every Bottleneck 1x1 weight fits comfortably in VMEM as bf16.
    assert K * N * 2 <= VMEM_LIMIT // 4, "TODO(synk): split-K fallback"
    prologue = scale is not None
    tm = _choose_tile(M, tm_pref or TM_PREF)
    nm = M // tm

    in_specs = [pl.BlockSpec((tm, K), lambda i: (i, 0))]
    args = [a]
    if prologue:
        in_specs += [pl.BlockSpec((1, K), lambda i: (0, 0)),
                     pl.BlockSpec((1, K), lambda i: (0, 0))]
        args += [scale.reshape(1, K).astype(jnp.float32),
                 shift.reshape(1, K).astype(jnp.float32)]
    in_specs.append(pl.BlockSpec((K, N), lambda i: (0, 0)))   # resident weight
    args.append(b_bf16)

    z, stats = pl.pallas_call(
        functools.partial(_mm_bn_kernel, prologue=prologue),
        out_shape=(jax.ShapeDtypeStruct((M, N), out_dtype),
                   jax.ShapeDtypeStruct((nm, 2, N), jnp.float32)),
        grid=(nm,),
        in_specs=in_specs,
        out_specs=(pl.BlockSpec((tm, N), lambda i: (i, 0)),
                   pl.BlockSpec((1, 2, N), lambda i: (i, 0, 0))),
        compiler_params=pltpu.CompilerParams(
            dimension_semantics=("parallel",),
            vmem_limit_bytes=VMEM_LIMIT),
    )(*args)
    return z, stats


# ----------------------------------------------------------------------------
# Kernel 2: fused BN1+ReLU prologue + 3x3 conv (pad=1, stride=1) + BN2 stats.
# One image per grid step; zero-padding and the 9 shifted taps are assembled
# in VMEM (bf16) as a single (H*W, 9C) slab -> one K=9C MXU matmul.
# ----------------------------------------------------------------------------
def _conv3x3_kernel(x_ref, scale_ref, shift_ref, w_ref, z_ref, stats_ref):
    _, H, W, C = x_ref.shape
    # bn1 (as affine) + relu prologue; cast to bf16 immediately so the padded
    # copy and the tap slab are half the VMEM / vld-vst traffic.
    x = jnp.maximum(x_ref[0].astype(jnp.float32) * scale_ref[...]
                    + shift_ref[...], 0.0).astype(jnp.bfloat16)
    zr = jnp.zeros((1, W, C), jnp.bfloat16)
    xp = jnp.concatenate([zr, x, zr], axis=0)                    # (H+2, W, C)
    zc = jnp.zeros((H + 2, 1, C), jnp.bfloat16)
    xp = jnp.concatenate([zc, xp, zc], axis=1)                   # (H+2, W+2, C)
    # 9 shifted taps fused into one K=9C matmul (weight pre-reshaped on host
    # in matching (kh, kw, cin) order).
    taps = [xp[kh:kh + H, kw:kw + W, :].reshape(H * W, C)
            for kh in range(3) for kw in range(3)]
    slab = jnp.concatenate(taps, axis=1)                         # (H*W, 9C)
    z = jnp.dot(slab, w_ref[...], preferred_element_type=jnp.float32)
    z_ref[0] = z.astype(z_ref.dtype)
    stats_ref[0] = jnp.concatenate(
        [jnp.sum(z, axis=0, keepdims=True),
         jnp.sum(z * z, axis=0, keepdims=True)], axis=0)


def conv3x3_bn_stats(x_4d, scale, shift, w9c_bf16, *, out_dtype=jnp.bfloat16):
    N, H, W, C = x_4d.shape
    K9, Cout = w9c_bf16.shape
    assert K9 == 9 * C
    # TODO(synk): spatial (row-halo) tiling for stage-sized activations on v7x;
    # one whole image per grid step is fine at these shapes.
    z, stats = pl.pallas_call(
        _conv3x3_kernel,
        out_shape=(jax.ShapeDtypeStruct((N, H * W, Cout), out_dtype),
                   jax.ShapeDtypeStruct((N, 2, Cout), jnp.float32)),
        grid=(N,),
        in_specs=[pl.BlockSpec((1, H, W, C), lambda n: (n, 0, 0, 0)),
                  pl.BlockSpec((1, 1, C), lambda n: (0, 0, 0)),
                  pl.BlockSpec((1, 1, C), lambda n: (0, 0, 0)),
                  pl.BlockSpec((9 * C, Cout), lambda n: (0, 0))],
        out_specs=(pl.BlockSpec((1, H * W, Cout), lambda n: (n, 0, 0)),
                   pl.BlockSpec((1, 2, Cout), lambda n: (n, 0, 0))),
        compiler_params=pltpu.CompilerParams(
            dimension_semantics=("parallel",),
            vmem_limit_bytes=VMEM_LIMIT),
    )(x_4d, scale.reshape(1, 1, C).astype(jnp.float32),
      shift.reshape(1, 1, C).astype(jnp.float32), w9c_bf16)
    return z, stats


# ----------------------------------------------------------------------------
# Kernel 3: BN3 (as affine) + identity residual + ReLU, tiled over rows.
# Pure HBM-roofline pass -> big tiles.
# ----------------------------------------------------------------------------
def _bn_add_relu_kernel(z_ref, scale_ref, shift_ref, res_ref, o_ref):
    o_ref[...] = jnp.maximum(
        z_ref[...].astype(jnp.float32) * scale_ref[...] + shift_ref[...]
        + res_ref[...], 0.0)


def bn_add_relu(z, scale, shift, residual, *, tm_pref=None):
    M, C = z.shape
    tm = _choose_tile(M, tm_pref or 2 * TM_PREF)
    # TODO(synk): alias output onto z (input_output_aliases) once this runs
    # under jit with a donatable intermediate.
    return pl.pallas_call(
        _bn_add_relu_kernel,
        out_shape=jax.ShapeDtypeStruct((M, C), jnp.float32),
        grid=(M // tm,),
        in_specs=[pl.BlockSpec((tm, C), lambda i: (i, 0)),
                  pl.BlockSpec((1, C), lambda i: (0, 0)),
                  pl.BlockSpec((1, C), lambda i: (0, 0)),
                  pl.BlockSpec((tm, C), lambda i: (i, 0))],
        out_specs=pl.BlockSpec((tm, C), lambda i: (i, 0)),
        compiler_params=pltpu.CompilerParams(
            dimension_semantics=("parallel",),
            vmem_limit_bytes=VMEM_LIMIT),
    )(z, scale.reshape(1, C).astype(jnp.float32),
      shift.reshape(1, C).astype(jnp.float32), residual)


# ----------------------------------------------------------------------------
# Glue: finalize BN affine from partial stats, parameter setup, forward.
# ----------------------------------------------------------------------------
def _bn_affine(stats, count, gamma, beta):
    """Training-mode BN scale/shift from per-tile (sum, sum_sq) partials.
    # TODO(synk): shifted/compensated accumulation for large-mean inputs."""
    s = jnp.sum(stats, axis=0)                       # (2, C)
    mean = s[0] / count
    var = jnp.maximum(s[1] / count - mean * mean, 0.0)
    scale = gamma * jax.lax.rsqrt(var + EPS)
    shift = beta - mean * scale
    return scale, shift


def init_params(key, inplanes, planes):
    outp = planes * EXPANSION
    ks = jax.random.split(key, 9)
    n = jax.random.normal
    return {
        "conv1_w": 0.1 * n(ks[0], (planes, inplanes, 1, 1), jnp.float32),
        "bn1_w": 1.0 + 0.1 * n(ks[1], (planes,), jnp.float32),
        "bn1_b": 0.1 * n(ks[2], (planes,), jnp.float32),
        "conv2_w": 0.1 * n(ks[3], (planes, planes, 3, 3), jnp.float32),
        "bn2_w": 1.0 + 0.1 * n(ks[4], (planes,), jnp.float32),
        "bn2_b": 0.1 * n(ks[5], (planes,), jnp.float32),
        "conv3_w": 0.1 * n(ks[6], (outp, planes, 1, 1), jnp.float32),
        "bn3_w": 1.0 + 0.1 * n(ks[7], (outp,), jnp.float32),
        "bn3_b": 0.1 * n(ks[8], (outp,), jnp.float32),
    }


def bottleneck_forward(x_nchw, p, *, stride=1):
    N, Cin, H, W = x_nchw.shape
    planes = p["conv2_w"].shape[0]
    outp = planes * EXPANSION
    # TODO(synk): downsample branch (1x1 conv + BN) and stride != 1 not
    # implemented; this configuration matches downsample=None in PyTorch.
    assert stride == 1 and Cin == outp, "identity residual requires these"
    M = N * H * W

    x_nhwc = jnp.transpose(x_nchw, (0, 2, 3, 1))                  # (N, H, W, Cin)
    x2d = x_nhwc.reshape(M, Cin)

    # conv1 (1x1): matmul + bn1 partial stats; z1 stored bf16.
    w1 = jnp.transpose(p["conv1_w"][:, :, 0, 0]).astype(jnp.bfloat16)
    z1, s1 = matmul_bn_stats(x2d, w1, out_dtype=jnp.bfloat16)     # (M, planes)
    sc1, sh1 = _bn_affine(s1, M, p["bn1_w"], p["bn1_b"])

    # conv2 (3x3, pad=1): bn1+relu prologue, single K=9C matmul, bn2 stats.
    w2 = jnp.transpose(p["conv2_w"], (2, 3, 1, 0)) \
            .reshape(9 * planes, planes).astype(jnp.bfloat16)
    z2, s2 = conv3x3_bn_stats(z1.reshape(N, H, W, planes), sc1, sh1, w2)
    sc2, sh2 = _bn_affine(s2, M, p["bn2_w"], p["bn2_b"])

    # conv3 (1x1): bn2+relu prologue, matmul, bn3 stats; z3 kept f32 so the
    # final bn3+residual+relu is full precision.
    w3 = jnp.transpose(p["conv3_w"][:, :, 0, 0]).astype(jnp.bfloat16)
    z3, s3 = matmul_bn_stats(z2.reshape(M, planes), w3, sc2, sh2,
                             out_dtype=jnp.float32)               # (M, outp)
    sc3, sh3 = _bn_affine(s3, M, p["bn3_w"], p["bn3_b"])

    # bn3 + identity residual + relu
    out = bn_add_relu(z3, sc3, sh3, x2d)
    return jnp.transpose(out.reshape(N, H, W, outp), (0, 3, 1, 2))


# ----------------------------------------------------------------------------
# Pure-JAX reference (training-mode BatchNorm, identity residual)
# ----------------------------------------------------------------------------
def reference_forward(x, p, *, stride=1):
    def conv(x, w, stride=1, pad=0):
        return jax.lax.conv_general_dilated(
            x, w, (stride, stride), [(pad, pad), (pad, pad)],
            dimension_numbers=("NCHW", "OIHW", "NCHW"))

    def bn(x, w, b):
        m = jnp.mean(x, axis=(0, 2, 3), keepdims=True)
        v = jnp.mean(jnp.square(x - m), axis=(0, 2, 3), keepdims=True)
        return ((x - m) / jnp.sqrt(v + EPS) * w.reshape(1, -1, 1, 1)
                + b.reshape(1, -1, 1, 1))

    out = jax.nn.relu(bn(conv(x, p["conv1_w"]), p["bn1_w"], p["bn1_b"]))
    out = jax.nn.relu(bn(conv(out, p["conv2_w"], stride=stride, pad=1),
                         p["bn2_w"], p["bn2_b"]))
    out = bn(conv(out, p["conv3_w"]), p["bn3_w"], p["bn3_b"])
    return jax.nn.relu(out + x)


# ----------------------------------------------------------------------------
if __name__ == "__main__":
    key = jax.random.PRNGKey(0)
    kx, kp = jax.random.split(key)

    # Bottleneck(inplanes=16, planes=4), stride=1, downsample=None
    N, inplanes, H, W = 2, 16, 16, 16
    planes = 4

    x = jax.random.normal(kx, (N, inplanes, H, W), jnp.float32)
    params = init_params(kp, inplanes, planes)

    out = bottleneck_forward(x, params, stride=1)
    out = jax.block_until_ready(out)
    assert out.shape == (N, planes * EXPANSION, H, W)

    ref = reference_forward(x, params, stride=1)
    err = float(jnp.max(jnp.abs(out - ref)))
    # Matmuls run with bf16 operands on the MXU (f32 accumulation) and the
    # z1/z2 intermediates are stored in bf16, so allow a looser tolerance
    # than the pure-f32 reference.
    if not err < 5e-2:
        raise AssertionError(f"mismatch vs reference: max abs err = {err}")

    print("KERNEL_OK")
</pallas_src>

<mosaic_0001>
module attributes {stable_mosaic.version = 11 : i64} {
  func.func @_mm_bn_kernel(%arg0: i32, %arg1: memref<512x16xf32, #tpu.memory_space<vmem>>, %arg2: memref<16x4xbf16, #tpu.memory_space<vmem>>, %arg3: memref<512x4xbf16, #tpu.memory_space<vmem>>, %arg4: memref<1x2x4xf32, #tpu.memory_space<vmem>>) attributes {dimension_semantics = [#tpu.dimension_semantics<parallel>], iteration_bounds = array<i64: 1>, scalar_prefetch = 0 : i64, scratch_operands = 0 : i64, tpu.core_type = #tpu.core_type<tc>, window_params = [{transform_indices = @transform_0, window_bounds = array<i64: 512, 16>}, {pipeline_mode = #tpu.pipeline_mode<synchronous>, transform_indices = @transform_1, window_bounds = array<i64: 16, 4>}, {transform_indices = @transform_2, window_bounds = array<i64: 512, 4>}, {transform_indices = @transform_3, window_bounds = array<i64: 1, 2, 4>}]} {
    %c0 = arith.constant 0 : index
    %c0_0 = arith.constant 0 : index
    %0 = vector.load %arg1[%c0, %c0_0] : memref<512x16xf32, #tpu.memory_space<vmem>>, vector<512x16xf32>
    %1 = arith.truncf %0 : vector<512x16xf32> to vector<512x16xbf16>
    %c0_1 = arith.constant 0 : index
    %c0_2 = arith.constant 0 : index
    %2 = vector.load %arg2[%c0_1, %c0_2] : memref<16x4xbf16, #tpu.memory_space<vmem>>, vector<16x4xbf16>
    %cst = arith.constant dense<0.000000e+00> : vector<512x4xf32>
    %3 = tpu.matmul %1, %2, %cst {dimension_numbers = #tpu.dot_dimension_numbers<[1], [0], [0], [1], [0, 0, 1, 1], [], []>} : vector<512x16xbf16>, vector<16x4xbf16>, vector<512x4xf32> -> vector<512x4xf32>
    %4 = arith.truncf %3 : vector<512x4xf32> to vector<512x4xbf16>
    %c0_3 = arith.constant 0 : index
    %c0_4 = arith.constant 0 : index
    %5 = vector.load %arg3[%c0_3, %c0_4] : memref<512x4xbf16, #tpu.memory_space<vmem>>, vector<512x4xbf16>
    tpu.vector_store %arg3[%c0_3, %c0_4], %4 {strides = array<i32>} : memref<512x4xbf16, #tpu.memory_space<vmem>>, vector<512x4xbf16>,
    %cst_5 = arith.constant dense<0.000000e+00> : vector<4xf32>
    %6 = vector.multi_reduction <add>, %3, %cst_5 [0] : vector<512x4xf32> to vector<4xf32>
    %7 = vector.shape_cast %6 : vector<4xf32> to vector<1x4xf32>
    %8 = arith.mulf %3, %3 : vector<512x4xf32>
    %cst_6 = arith.constant dense<0.000000e+00> : vector<4xf32>
    %9 = vector.multi_reduction <add>, %8, %cst_6 [0] : vector<512x4xf32> to vector<4xf32>
    %10 = vector.shape_cast %9 : vector<4xf32> to vector<1x4xf32>
    %11 = tpu.concatenate %7, %10 in 0 : vector<1x4xf32>, vector<1x4xf32> -> vector<2x4xf32>
    %c0_7 = arith.constant 0 : index
    %c0_8 = arith.constant 0 : index
    %c0_9 = arith.constant 0 : index
    %12 = vector.load %arg4[%c0_7, %c0_8, %c0_9] : memref<1x2x4xf32, #tpu.memory_space<vmem>>, vector<1x2x4xf32>
    %13 = vector.shape_cast %12 : vector<1x2x4xf32> to vector<2x4xf32>
    %14 = vector.shape_cast %11 : vector<2x4xf32> to vector<1x2x4xf32>
    tpu.vector_store %arg4[%c0_7, %c0_8, %c0_9], %14 {strides = array<i32>} : memref<1x2x4xf32, #tpu.memory_space<vmem>>, vector<1x2x4xf32>,
    return
  }
  func.func @transform_0(%arg0: i32) -> (i32, i32) {
    %c0_i32 = arith.constant 0 : i32
    %c0_i32_0 = arith.constant 0 : i32
    return %arg0, %c0_i32 : i32, i32
  }
  func.func @transform_1(%arg0: i32) -> (i32, i32) {
    %c0_i32 = arith.constant 0 : i32
    %c0_i32_0 = arith.constant 0 : i32
    %c0_i32_1 = arith.constant 0 : i32
    return %c0_i32, %c0_i32_0 : i32, i32
  }
  func.func @transform_2(%arg0: i32) -> (i32, i32) {
    %c0_i32 = arith.constant 0 : i32
    %c0_i32_0 = arith.constant 0 : i32
    return %arg0, %c0_i32 : i32, i32
  }
  func.func @transform_3(%arg0: i32) -> (i32, i32, i32) {
    %c0_i32 = arith.constant 0 : i32
    %c0_i32_0 = arith.constant 0 : i32
    %c0_i32_1 = arith.constant 0 : i32
    return %arg0, %c0_i32, %c0_i32_0 : i32, i32, i32
  }
}

</mosaic_0001>

<bundles_post_ra>
// kernel: tpu_custom_call.1
= control target key start
LH: loop header
LB: loop body
LE: loop exit
PB: predicated region body
PF: predicated region fallthrough
CT: control target
= control target key end

     0   :  { %vm119_vm0 = vcmask 130048   ;;  %s2335_s0 = inlined_call_operand.vmem [shape: f32[512,16], index: 0, kind: input, shape index: {}]   ;;  %s2336_s1 = inlined_call_operand.vmem [shape: bf16[16,4], index: 1, kind: input, shape index: {}]   ;;  %s2337_s2 = inlined_call_operand.vmem [shape: bf16[512,4], index: 2, kind: output, shape index: {0}]   ;;  %s2338_s3 = inlined_call_operand.hbm [shape: f32[1,2,4], index: 3, kind: output, shape index: {1}]  }
   0x1   :  { %v1442_v0 = vld [vmem:[%s2336_s1] sm:$0xff]   ;;  %v16_v2 = vld [vmem:[%s2335_s0 + $0x8] sm:$0xff]  ;;  %v17_v3 = vld [vmem:[%s2335_s0 + $0x10] sm:$0xff] }
   0x2   :  { %v15_v1 = vld [vmem:[%s2335_s0] sm:$0xff]  ;;  %1373 = vmatprep.subr.bf16.mxu0 %v1442_v0  ;;  %v18_v5 = vld [vmem:[%s2335_s0 + $0x18] sm:$0xff]  ;;  %v20_v7 = vld [vmem:[%s2335_s0 + $0x28] sm:$0xff]  ;;  %1439 = vmatprep.subr.bf16.mxu1 %v1442_v0 }
   0x3   :  { %v79_v4 = vpack.c.bf16 %v16_v2, %v15_v1  ;;  %v19_v6 = vld [vmem:[%s2335_s0 + $0x20] sm:$0xff]  ;;  %1374 = vmatpush3.bf16.msra.mxu0 %v1442_v0  ;;  %v80_v8 = vpack.c.bf16 %v18_v5, %v17_v3  ;;  %1440 = vmatpush3.bf16.msra.mxu1 %v1442_v0  ;;  %v21_v10 = vld [vmem:[%s2335_s0 + $0x30] sm:$0xff]  ;;  %v22_v11 = vld [vmem:[%s2335_s0 + $0x38] sm:$0xff] }
   0x4   :  { %v81_v9 = vpack.c.bf16 %v20_v7, %v19_v6  ;;  %v23_v12 = vld [vmem:[%s2335_s0 + $0x40] sm:$0xff]  ;;  %v24_v13 = vld [vmem:[%s2335_s0 + $0x48] sm:$0xff]  ;;  %v82_v14 = vpack.c.bf16 %v22_v11, %v21_v10  ;;  %v49_v18 = vld [vmem:[%s2335_s0 + $0x110] sm:$0xff] }
   0x5   :  { %1375 = vmatprep.mubr.msk.bf16.mxu0 %vm119_vm0, %v79_v4  ;;  %v83_v15 = vpack.c.bf16 %v24_v13, %v23_v12  ;;  %v47_v16 = vld [vmem:[%s2335_s0 + $0x100] sm:$0xff]  ;;  %v48_v17 = vld [vmem:[%s2335_s0 + $0x108] sm:$0xff]  ;;  %v50_v19 = vld [vmem:[%s2335_s0 + $0x118] sm:$0xff] }
   0x6   :  { %1376 = vmatmul.mubr.msk.bf16.vlgmr.msra.gmra.mrb[0].mxu0 %vm119_vm0, %v80_v8  ;;  %v95_v20 = vpack.c.bf16 %v48_v17, %v47_v16  ;;  %v96_v21 = vpack.c.bf16 %v50_v19, %v49_v18  ;;  %v51_v22 = vld [vmem:[%s2335_s0 + $0x120] sm:$0xff]  ;;  %v52_v23 = vld [vmem:[%s2335_s0 + $0x128] sm:$0xff]  ;;  %v25_v25 = vld [vmem:[%s2335_s0 + $0x50] sm:$0xff] }
   0x7   :  { %1379 = vmatprep.mubr.msk.bf16.mxu0 %vm119_vm0, %v81_v9  ;;  %v97_v24 = vpack.c.bf16 %v52_v23, %v51_v22  ;;  %v26_v26 = vld [vmem:[%s2335_s0 + $0x58] sm:$0xff]  ;;  %v27_v27 = vld [vmem:[%s2335_s0 + $0x60] sm:$0xff]  ;;  %v28_v28 = vld [vmem:[%s2335_s0 + $0x68] sm:$0xff] }
   0x8   :  { %1407 = vmatprep.mubr.msk.bf16.mxu1 %vm119_vm0, %v95_v20  ;;  %v53_v29 = vld [vmem:[%s2335_s0 + $0x130] sm:$0xff]  ;;  %v54_v30 = vld [vmem:[%s2335_s0 + $0x138] sm:$0xff]  ;;  %v84_v31 = vpack.c.bf16 %v26_v26, %v25_v25  ;;  %v55_v32 = vld [vmem:[%s2335_s0 + $0x140] sm:$0xff]  ;;  %v85_v34 = vpack.c.bf16 %v28_v28, %v27_v27 }
   0x9   :  { %1408 = vmatmul.mubr.msk.bf16.vlgmr.msra.gmra.mrb[0].mxu1 %vm119_vm0, %v96_v21  ;;  %v56_v33 = vld [vmem:[%s2335_s0 + $0x148] sm:$0xff]  ;;  %v98_v35 = vpack.c.bf16 %v54_v30, %v53_v29 }
   0xa   :  { %1411 = vmatprep.mubr.msk.bf16.mxu1 %vm119_vm0, %v97_v24  ;;  %v99_v36 = vpack.c.bf16 %v56_v33, %v55_v32 }
   0xe   :  { %1380 = vmatmul.mubr.msk.bf16.gmra.mrb[4].mxu0 %vm119_vm0, %v82_v14 }
   0xf   :  { %1383 = vmatprep.mubr.msk.bf16.mxu0 %vm119_vm0, %v83_v15 }
  0x16   :  { %1384 = vmatmul.mubr.msk.bf16.gmra.mrb[8].mxu0 %vm119_vm0, %v84_v31 }
  0x17   :  { %9 = vsyncpa [#allocation3], 0  ;;  %1387 = vmatprep.mubr.msk.bf16.mxu0 %vm119_vm0, %v85_v34  ;;  %v29_v37 = vld [vmem:[%s2335_s0 + $0x70] sm:$0xff]  ;;  %v30_v38 = vld [vmem:[%s2335_s0 + $0x78] sm:$0xff]  ;;  %1412 = vmatmul.mubr.msk.bf16.gmra.mrb[4].mxu1 %vm119_vm0, %v98_v35  ;;  %vm761_vm1 = vcmask 27648   ;;  %vm826_vm2 = vcmask 31744  }
  0x18   :  { %v31_v39 = vld [vmem:[%s2335_s0 + $0x80] sm:$0xff]  ;;  %v32_v40 = vld [vmem:[%s2335_s0 + $0x88] sm:$0xff]  ;;  %1415 = vmatprep.mubr.msk.bf16.mxu1 %vm119_vm0, %v99_v36  ;;  %v57_v41 = vld [vmem:[%s2335_s0 + $0x150] sm:$0xff]  ;;  %v86_v43 = vpack.c.bf16 %v30_v38, %v29_v37  ;;  %vm1157_vm3 = vcmask 1040384   ;;  %vm1159_vm4 = vcmask 25600  }
  0x19   :  { %v58_v42 = vld [vmem:[%s2335_s0 + $0x158] sm:$0xff]  ;;  %v59_v44 = vld [vmem:[%s2335_s0 + $0x160] sm:$0xff]  ;;  %v60_v45 = vld [vmem:[%s2335_s0 + $0x168] sm:$0xff]  ;;  %v87_v46 = vpack.c.bf16 %v32_v40, %v31_v39 }
  0x1a   :  { %v100_v47 = vpack.c.bf16 %v58_v42, %v57_v41  ;;  %v101_v48 = vpack.c.bf16 %v60_v45, %v59_v44  ;;  %v33_v49 = vld [vmem:[%s2335_s0 + $0x90] sm:$0xff]  ;;  %v34_v50 = vld [vmem:[%s2335_s0 + $0x98] sm:$0xff]  ;;  %v35_v51 = vld [vmem:[%s2335_s0 + $0xa0] sm:$0xff] }
  0x1b   :  { %v36_v52 = vld [vmem:[%s2335_s0 + $0xa8] sm:$0xff]  ;;  %v61_v53 = vld [vmem:[%s2335_s0 + $0x170] sm:$0xff]  ;;  %v62_v54 = vld [vmem:[%s2335_s0 + $0x178] sm:$0xff]  ;;  %v88_v55 = vpack.c.bf16 %v34_v50, %v33_v49 }
  0x1c   :  { %v63_v56 = vld [vmem:[%s2335_s0 + $0x180] sm:$0xff]  ;;  %v64_v57 = vld [vmem:[%s2335_s0 + $0x188] sm:$0xff]  ;;  %v89_v58 = vpack.c.bf16 %v36_v52, %v35_v51  ;;  %v102_v59 = vpack.c.bf16 %v62_v54, %v61_v53  ;;  %v37_v61 = vld [vmem:[%s2335_s0 + $0xb0] sm:$0xff] }
  0x1d   :  { %v103_v60 = vpack.c.bf16 %v64_v57, %v63_v56  ;;  %v38_v62 = vld [vmem:[%s2335_s0 + $0xb8] sm:$0xff]  ;;  %v39_v63 = vld [vmem:[%s2335_s0 + $0xc0] sm:$0xff]  ;;  %v40_v0 = vld [vmem:[%s2335_s0 + $0xc8] sm:$0xff] }
  0x1e   :  { %1388 = vmatmul.mubr.msk.bf16.gmra.mrb[12].mxu0 %vm119_vm0, %v86_v43  ;;  %v65_v1 = vld [vmem:[%s2335_s0 + $0x190] sm:$0xff]  ;;  %v66_v2 = vld [vmem:[%s2335_s0 + $0x198] sm:$0xff]  ;;  %v90_v3 = vpack.c.bf16 %v38_v62, %v37_v61  ;;  %v67_v4 = vld [vmem:[%s2335_s0 + $0x1a0] sm:$0xff]  ;;  %v91_v6 = vpack.c.bf16 %v40_v0, %v39_v63 }
  0x1f   :  { %1391 = vmatprep.mubr.msk.bf16.mxu0 %vm119_vm0, %v87_v46  ;;  %1416 = vmatmul.mubr.msk.bf16.gmra.mrb[8].mxu1 %vm119_vm0, %v100_v47  ;;  %v68_v5 = vld [vmem:[%s2335_s0 + $0x1a8] sm:$0xff]  ;;  %v104_v7 = vpack.c.bf16 %v66_v2, %v65_v1  ;;  %v41_v9 = vld [vmem:[%s2335_s0 + $0xd0] sm:$0xff]  ;;  %v42_v10 = vld [vmem:[%s2335_s0 + $0xd8] sm:$0xff] }
  0x20   :  { %1419 = vmatprep.mubr.msk.bf16.mxu1 %vm119_vm0, %v101_v48  ;;  %v105_v8 = vpack.c.bf16 %v68_v5, %v67_v4  ;;  %v43_v11 = vld [vmem:[%s2335_s0 + $0xe0] sm:$0xff]  ;;  %v44_v12 = vld [vmem:[%s2335_s0 + $0xe8] sm:$0xff]  ;;  %v69_v13 = vld [vmem:[%s2335_s0 + $0x1b0] sm:$0xff]  ;;  %v92_v15 = vpack.c.bf16 %v42_v10, %v41_v9 }
  0x21   :  { %v70_v14 = vld [vmem:[%s2335_s0 + $0x1b8] sm:$0xff]  ;;  %v71_v16 = vld [vmem:[%s2335_s0 + $0x1c0] sm:$0xff]  ;;  %v72_v17 = vld [vmem:[%s2335_s0 + $0x1c8] sm:$0xff]  ;;  %v93_v18 = vpack.c.bf16 %v44_v12, %v43_v11 }
  0x22   :  { %v106_v19 = vpack.c.bf16 %v70_v14, %v69_v13  ;;  %v107_v20 = vpack.c.bf16 %v72_v17, %v71_v16  ;;  %v45_v21 = vld [vmem:[%s2335_s0 + $0xf0] sm:$0xff]  ;;  %v46_v22 = vld [vmem:[%s2335_s0 + $0xf8] sm:$0xff]  ;;  %v75_v26 = vld [vmem:[%s2335_s0 + $0x1e0] sm:$0xff] }
  0x23   :  { %v73_v23 = vld [vmem:[%s2335_s0 + $0x1d0] sm:$0xff]  ;;  %v74_v24 = vld [vmem:[%s2335_s0 + $0x1d8] sm:$0xff]  ;;  %v94_v25 = vpack.c.bf16 %v46_v22, %v45_v21  ;;  %v76_v27 = vld [vmem:[%s2335_s0 + $0x1e8] sm:$0xff] }
  0x24   :  { %v108_v28 = vpack.c.bf16 %v74_v24, %v73_v23  ;;  %v109_v29 = vpack.c.bf16 %v76_v27, %v75_v26  ;;  %v77_v30 = vld [vmem:[%s2335_s0 + $0x1f0] sm:$0xff]  ;;  %v78_v31 = vld [vmem:[%s2335_s0 + $0x1f8] sm:$0xff] }
  0x25   :  { %v110_v32 = vpack.c.bf16 %v78_v31, %v77_v30 }
  0x26   :  { %1392 = vmatmul.mubr.msk.bf16.gmra.mrb[16].mxu0 %vm119_vm0, %v88_v55 }
  0x27   :  { %1395 = vmatprep.mubr.msk.bf16.mxu0 %vm119_vm0, %v89_v58  ;;  %1420 = vmatmul.mubr.msk.bf16.gmra.mrb[12].mxu1 %vm119_vm0, %v102_v59 }
  0x28   :  { %1423 = vmatprep.mubr.msk.bf16.mxu1 %vm119_vm0, %v103_v60 }
  0x2e   :  { %1396 = vmatmul.mubr.msk.bf16.gmra.mrb[20].mxu0 %vm119_vm0, %v90_v3 }
  0x2f   :  { %1399 = vmatprep.mubr.msk.bf16.mxu0 %vm119_vm0, %v91_v6  ;;  %1424 = vmatmul.mubr.msk.bf16.gmra.mrb[16].mxu1 %vm119_vm0, %v104_v7 }
  0x30   :  { %1427 = vmatprep.mubr.msk.bf16.mxu1 %vm119_vm0, %v105_v8 }
  0x36   :  { %1400 = vmatmul.mubr.msk.bf16.gmra.mrb[24].mxu0 %vm119_vm0, %v92_v15 }
  0x37   :  { %1403 = vmatprep.mubr.msk.bf16.mxu0 %vm119_vm0, %v93_v18  ;;  %1428 = vmatmul.mubr.msk.bf16.gmra.mrb[20].mxu1 %vm119_vm0, %v106_v19 }
  0x38   :  { %1431 = vmatprep.mubr.msk.bf16.mxu1 %vm119_vm0, %v107_v20 }
  0x3e   :  { %1404 = vmatmul.mubr.msk.bf16.gmra.mrb[28].mxu0 %vm119_vm0, %v94_v25 }
  0x3f   :  { %1432 = vmatmul.mubr.msk.bf16.gmra.mrb[24].mxu1 %vm119_vm0, %v108_v28 }
  0x40   :  { %1435 = vmatprep.mubr.msk.bf16.mxu1 %vm119_vm0, %v109_v29 }
  0x47   :  { %1436 = vmatmul.mubr.msk.bf16.gmra.mrb[28].mxu1 %vm119_vm0, %v110_v32 }
  0xd9   :  { %v1377_v33 = vpop.f32.mrb[0].mxu0 }
  0xda   :  { %v1278_v34 = vpack.c.bf16 %v1377_v33, %v1377_v33  ;;  %v250_v35 = vpop.f32.mrb[1].mxu0  ;;  %v962_v39 = vmul.f32 %v1377_v33, %v1377_v33  ;;  %v830_v48 = vsel %vm826_vm2, %v1377_v33, 0.0 }
  0xdb   :  { %v1276_v36 = vpack.c.bf16 %v250_v35, %v250_v35  ;;  %v960_v37 = vmul.f32 %v250_v35, %v250_v35  ;;  %v1378_v38 = vpop.f32.mrb[2].mxu0  ;;  %v827_v42 = vsel %vm826_vm2, %v250_v35, 0.0 }
  0xdc   :  { %764 = vst.msk [vmem:[%s2337_s2 + $0x8] sm:$0xf] %vm761_vm1, %v1278_v34  ;;  %v1279_v40 = vpack.c.bf16 %v1378_v38, %v1378_v38  ;;  %v253_v41 = vpop.f32.mrb[3].mxu0  ;;  %v963_v46 = vmul.f32 %v1378_v38, %v1378_v38  ;;  %v1027_v53 = vsel %vm826_vm2, %v962_v39, 0.0  ;;  %v832_v55 = vsel %vm826_vm2, %v1378_v38, 0.0  ;;  %v1740_v1 = vpop.f32.mrb[0].mxu1 }
  0xdd   :  { %762 = vst.msk [vmem:[%s2337_s2] sm:$0xf] %vm761_vm1, %v1276_v36  ;;  %v1277_v43 = vpack.c.bf16 %v253_v41, %v253_v41  ;;  %v828_v44 = vsel %vm826_vm2, %v253_v41, 0.0  ;;  %v961_v45 = vmul.f32 %v253_v41, %v253_v41  ;;  %v1024_v49 = vsel %vm826_vm2, %v960_v37, 0.0  ;;  %v1746_v5 = vpop.f32.mrb[1].mxu1 }
  0xde   :  { %765 = vst.msk [vmem:[%s2337_s2 + $0xc] sm:$0xf] %vm761_vm1, %v1279_v40  ;;  %v829_v47 = vadd.f32 %v828_v44, %v827_v42  ;;  %v1029_v56 = vsel %vm826_vm2, %v963_v46, 0.0  ;;  %v1753_v10 = vpop.f32.mrb[2].mxu1  ;;  %v1310_v14 = vpack.c.bf16 %v1740_v1, %v1740_v1  ;;  %v1308_v20 = vpack.c.bf16 %v1746_v5, %v1746_v5 }
  0xdf   :  { %763 = vst.msk [vmem:[%s2337_s2 + $0x4] sm:$0xf] %vm761_vm1, %v1277_v43  ;;  %v1025_v50 = vsel %vm826_vm2, %v961_v45, 0.0  ;;  %v1762_v15 = vpop.f32.mrb[3].mxu1  ;;  %v1311_v24 = vpack.c.bf16 %v1753_v10, %v1753_v10 }
  0xe0   :  { %v831_v51 = vadd.f32 %v830_v48, %v829_v47  ;;  %v1026_v52 = vadd.f32 %v1025_v50, %v1024_v49  ;;  %796 = vst.msk [vmem:[%s2337_s2 + $0x88] sm:$0xf] %vm761_vm1, %v1310_v14  ;;  %794 = vst.msk [vmem:[%s2337_s2 + $0x80] sm:$0xf] %vm761_vm1, %v1308_v20 }
  0xe1   :  { %v1381_v54 = vpop.f32.mrb[4].mxu0  ;;  %797 = vst.msk [vmem:[%s2337_s2 + $0x8c] sm:$0xf] %vm761_vm1, %v1311_v24 }
  0xe2   :  { %v1028_v57 = vadd.f32 %v1027_v53, %v1026_v52  ;;  %v1282_v58 = vpack.c.bf16 %v1381_v54, %v1381_v54  ;;  %v266_v59 = vpop.f32.mrb[5].mxu0  ;;  %v833_v61 = vadd.f32 %v832_v55, %v831_v51  ;;  %v966_v6 = vmul.f32 %v1381_v54, %v1381_v54 }
  0xe3   :  { %v1280_v60 = vpack.c.bf16 %v266_v59, %v266_v59  ;;  %v834_v62 = vsel %vm826_vm2, %v266_v59, 0.0  ;;  %v964_v63 = vmul.f32 %v266_v59, %v266_v59  ;;  %v1382_v0 = vpop.f32.mrb[6].mxu0  ;;  %v838_v17 = vsel %vm826_vm2, %v1381_v54, 0.0 }
  0xe4   :  { %768 = vst.msk [vmem:[%s2337_s2 + $0x18] sm:$0xf] %vm761_vm1, %v1282_v58  ;;  %v1030_v2 = vadd.f32 %v1029_v56, %v1028_v57  ;;  %v1283_v3 = vpack.c.bf16 %v1382_v0, %v1382_v0  ;;  %v269_v4 = vpop.f32.mrb[7].mxu0  ;;  %v835_v7 = vadd.f32 %v834_v62, %v833_v61  ;;  %v967_v18 = vmul.f32 %v1382_v0, %v1382_v0 }
  0xe5   :  { %766 = vst.msk [vmem:[%s2337_s2 + $0x10] sm:$0xf] %vm761_vm1, %v1280_v60  ;;  %v1031_v8 = vsel %vm826_vm2, %v964_v63, 0.0  ;;  %v1281_v9 = vpack.c.bf16 %v269_v4, %v269_v4  ;;  %v836_v12 = vsel %vm826_vm2, %v269_v4, 0.0  ;;  %v965_v13 = vmul.f32 %v269_v4, %v269_v4 }
  0xe6   :  { %v1032_v11 = vadd.f32 %v1031_v8, %v1030_v2  ;;  %769 = vst.msk [vmem:[%s2337_s2 + $0x1c] sm:$0xf] %vm761_vm1, %v1283_v3  ;;  %v837_v16 = vadd.f32 %v836_v12, %v835_v7  ;;  %v1035_v25 = vsel %vm826_vm2, %v966_v6, 0.0  ;;  %v840_v26 = vsel %vm826_vm2, %v1382_v0, 0.0 }
  0xe7   :  { %767 = vst.msk [vmem:[%s2337_s2 + $0x14] sm:$0xf] %vm761_vm1, %v1281_v9  ;;  %v1033_v19 = vsel %vm826_vm2, %v965_v13, 0.0  ;;  %v1037_v35 = vsel %vm826_vm2, %v967_v18, 0.0  ;;  %v1309_v54 = vpack.c.bf16 %v1762_v15, %v1762_v15 }
  0xe8   :  { %v839_v21 = vadd.f32 %v838_v17, %v837_v16  ;;  %v1034_v22 = vadd.f32 %v1033_v19, %v1032_v11 }
  0xe9   :  { %v1385_v23 = vpop.f32.mrb[8].mxu0  ;;  %795 = vst.msk [vmem:[%s2337_s2 + $0x84] sm:$0xf] %vm761_vm1, %v1309_v54 }
  0xea   :  { %v1286_v27 = vpack.c.bf16 %v1385_v23, %v1385_v23  ;;  %v282_v28 = vpop.f32.mrb[9].mxu0  ;;  %v1036_v29 = vadd.f32 %v1035_v25, %v1034_v22  ;;  %v841_v31 = vadd.f32 %v840_v26, %v839_v21  ;;  %v1789_v34 = vpop.f32.mrb[4].mxu1  ;;  %v970_v44 = vmul.f32 %v1385_v23, %v1385_v23 }
  0xeb   :  { %v1284_v30 = vpack.c.bf16 %v282_v28, %v282_v28  ;;  %v842_v32 = vsel %vm826_vm2, %v282_v28, 0.0  ;;  %v1386_v33 = vpop.f32.mrb[10].mxu0  ;;  %v968_v36 = vmul.f32 %v282_v28, %v282_v28  ;;  %v1796_v39 = vpop.f32.mrb[5].mxu1  ;;  %v846_v51 = vsel %vm826_vm2, %v1385_v23, 0.0 }
  0xec   :  { %772 = vst.msk [vmem:[%s2337_s2 + $0x28] sm:$0xf] %vm761_vm1, %v1286_v27  ;;  %v1287_v37 = vpack.c.bf16 %v1386_v33, %v1386_v33  ;;  %v285_v38 = vpop.f32.mrb[11].mxu0  ;;  %v843_v40 = vadd.f32 %v842_v32, %v841_v31  ;;  %v1038_v41 = vadd.f32 %v1037_v35, %v1036_v29  ;;  %v1802_v43 = vpop.f32.mrb[6].mxu1  ;;  %v971_v52 = vmul.f32 %v1386_v33, %v1386_v33 }
  0xed   :  { %770 = vst.msk [vmem:[%s2337_s2 + $0x20] sm:$0xf] %vm761_vm1, %v1284_v30  ;;  %v1285_v42 = vpack.c.bf16 %v285_v38, %v285_v38  ;;  %v1039_v45 = vsel %vm826_vm2, %v968_v36, 0.0  ;;  %v844_v46 = vsel %vm826_vm2, %v285_v38, 0.0  ;;  %v969_v47 = vmul.f32 %v285_v38, %v285_v38  ;;  %v1810_v48 = vpop.f32.mrb[7].mxu1 }
  0xee   :  { %773 = vst.msk [vmem:[%s2337_s2 + $0x2c] sm:$0xf] %vm761_vm1, %v1287_v37  ;;  %v1040_v49 = vadd.f32 %v1039_v45, %v1038_v41  ;;  %v845_v50 = vadd.f32 %v844_v46, %v843_v40  ;;  %v1314_v58 = vpack.c.bf16 %v1789_v34, %v1789_v34  ;;  %v1043_v59 = vsel %vm826_vm2, %v970_v44, 0.0 }
  0xef   :  { %771 = vst.msk [vmem:[%s2337_s2 + $0x24] sm:$0xf] %vm761_vm1, %v1285_v42  ;;  %v1041_v53 = vsel %vm826_vm2, %v969_v47, 0.0  ;;  %v848_v60 = vsel %vm826_vm2, %v1386_v33, 0.0  ;;  %v1045_v7 = vsel %vm826_vm2, %v971_v52, 0.0  ;;  %v1312_v28 = vpack.c.bf16 %v1796_v39, %v1796_v39 }
  0xf0   :  { %v847_v55 = vadd.f32 %v846_v51, %v845_v50  ;;  %v1042_v56 = vadd.f32 %v1041_v53, %v1040_v49  ;;  %800 = vst.msk [vmem:[%s2337_s2 + $0x98] sm:$0xf] %vm761_vm1, %v1314_v58  ;;  %v1315_v32 = vpack.c.bf16 %v1802_v43, %v1802_v43 }
  0xf1   :  { %v1389_v57 = vpop.f32.mrb[12].mxu0  ;;  %798 = vst.msk [vmem:[%s2337_s2 + $0x90] sm:$0xf] %vm761_vm1, %v1312_v28 }
  0xf2   :  { %v1290_v61 = vpack.c.bf16 %v1389_v57, %v1389_v57  ;;  %v298_v62 = vpop.f32.mrb[13].mxu0  ;;  %v1044_v63 = vadd.f32 %v1043_v59, %v1042_v56  ;;  %v849_v2 = vadd.f32 %v848_v60, %v847_v55  ;;  %v1833_v6 = vpop.f32.mrb[8].mxu1  ;;  %v974_v18 = vmul.f32 %v1389_v57, %v1389_v57  ;;  %801 = vst.msk [vmem:[%s2337_s2 + $0x9c] sm:$0xf] %vm761_vm1, %v1315_v32 }
  0xf3   :  { %v1288_v0 = vpack.c.bf16 %v298_v62, %v298_v62  ;;  %v850_v3 = vsel %vm826_vm2, %v298_v62, 0.0  ;;  %v1390_v4 = vpop.f32.mrb[14].mxu0  ;;  %v972_v8 = vmul.f32 %v298_v62, %v298_v62  ;;  %v1840_v12 = vpop.f32.mrb[9].mxu1  ;;  %v854_v25 = vsel %vm826_vm2, %v1389_v57, 0.0 }
  0xf4   :  { %776 = vst.msk [vmem:[%s2337_s2 + $0x38] sm:$0xf] %vm761_vm1, %v1290_v61  ;;  %v1291_v9 = vpack.c.bf16 %v1390_v4, %v1390_v4  ;;  %v301_v11 = vpop.f32.mrb[15].mxu0  ;;  %v851_v13 = vadd.f32 %v850_v3, %v849_v2  ;;  %v1046_v14 = vadd.f32 %v1045_v7, %v1044_v63  ;;  %v1846_v17 = vpop.f32.mrb[10].mxu1  ;;  %v975_v26 = vmul.f32 %v1390_v4, %v1390_v4 }
  0xf5   :  { %774 = vst.msk [vmem:[%s2337_s2 + $0x30] sm:$0xf] %vm761_vm1, %v1288_v0  ;;  %v1289_v16 = vpack.c.bf16 %v301_v11, %v301_v11  ;;  %v1047_v19 = vsel %vm826_vm2, %v972_v8, 0.0  ;;  %v852_v20 = vsel %vm826_vm2, %v301_v11, 0.0  ;;  %v973_v21 = vmul.f32 %v301_v11, %v301_v11  ;;  %v1854_v22 = vpop.f32.mrb[11].mxu1 }
  0xf6   :  { %777 = vst.msk [vmem:[%s2337_s2 + $0x3c] sm:$0xf] %vm761_vm1, %v1291_v9  ;;  %v1048_v23 = vadd.f32 %v1047_v19, %v1046_v14  ;;  %v853_v24 = vadd.f32 %v852_v20, %v851_v13  ;;  %v1051_v33 = vsel %vm826_vm2, %v974_v18, 0.0  ;;  %v856_v35 = vsel %vm826_vm2, %v1390_v4, 0.0 }
  0xf7   :  { %775 = vst.msk [vmem:[%s2337_s2 + $0x34] sm:$0xf] %vm761_vm1, %v1289_v16  ;;  %v1049_v27 = vsel %vm826_vm2, %v973_v21, 0.0  ;;  %v1053_v46 = vsel %vm826_vm2, %v975_v26, 0.0  ;;  %v1313_v3 = vpack.c.bf16 %v1810_v48, %v1810_v48  ;;  %v1318_v9 = vpack.c.bf16 %v1833_v6, %v1833_v6 }
  0xf8   :  { %v855_v29 = vadd.f32 %v854_v25, %v853_v24  ;;  %v1050_v30 = vadd.f32 %v1049_v27, %v1048_v23 }
  0xf9   :  { %v1393_v31 = vpop.f32.mrb[16].mxu0  ;;  %799 = vst.msk [vmem:[%s2337_s2 + $0x94] sm:$0xf] %vm761_vm1, %v1313_v3  ;;  %804 = vst.msk [vmem:[%s2337_s2 + $0xa8] sm:$0xf] %vm761_vm1, %v1318_v9 }
  0xfa   :  { %v1294_v36 = vpack.c.bf16 %v1393_v31, %v1393_v31  ;;  %v314_v37 = vpop.f32.mrb[17].mxu0  ;;  %v1052_v38 = vadd.f32 %v1051_v33, %v1050_v30  ;;  %v857_v41 = vadd.f32 %v856_v35, %v855_v29  ;;  %v1877_v45 = vpop.f32.mrb[12].mxu1  ;;  %v978_v56 = vmul.f32 %v1393_v31, %v1393_v31 }
  0xfb   :  { %v1292_v40 = vpack.c.bf16 %v314_v37, %v314_v37  ;;  %v858_v42 = vsel %vm826_vm2, %v314_v37, 0.0  ;;  %v1394_v44 = vpop.f32.mrb[18].mxu0  ;;  %v976_v47 = vmul.f32 %v314_v37, %v314_v37  ;;  %v1884_v51 = vpop.f32.mrb[13].mxu1  ;;  %v862_v63 = vsel %vm826_vm2, %v1393_v31, 0.0 }
  0xfc   :  { %780 = vst.msk [vmem:[%s2337_s2 + $0x48] sm:$0xf] %vm761_vm1, %v1294_v36  ;;  %v1295_v49 = vpack.c.bf16 %v1394_v44, %v1394_v44  ;;  %v317_v50 = vpop.f32.mrb[19].mxu0  ;;  %v859_v52 = vadd.f32 %v858_v42, %v857_v41  ;;  %v1054_v53 = vadd.f32 %v1053_v46, %v1052_v38  ;;  %v1890_v55 = vpop.f32.mrb[14].mxu1  ;;  %v979_v0 = vmul.f32 %v1394_v44, %v1394_v44 }
  0xfd   :  { %778 = vst.msk [vmem:[%s2337_s2 + $0x40] sm:$0xf] %vm761_vm1, %v1292_v40  ;;  %v1293_v54 = vpack.c.bf16 %v317_v50, %v317_v50  ;;  %v1055_v57 = vsel %vm826_vm2, %v976_v47, 0.0  ;;  %v860_v58 = vsel %vm826_vm2, %v317_v50, 0.0  ;;  %v977_v59 = vmul.f32 %v317_v50, %v317_v50  ;;  %v1898_v60 = vpop.f32.mrb[15].mxu1 }
  0xfe   :  { %781 = vst.msk [vmem:[%s2337_s2 + $0x4c] sm:$0xf] %vm761_vm1, %v1295_v49  ;;  %v1056_v61 = vadd.f32 %v1055_v57, %v1054_v53  ;;  %v861_v62 = vadd.f32 %v860_v58, %v859_v52  ;;  %v1059_v11 = vsel %vm826_vm2, %v978_v56, 0.0  ;;  %v864_v13 = vsel %vm826_vm2, %v1394_v44, 0.0 }
  0xff   :  { %779 = vst.msk [vmem:[%s2337_s2 + $0x44] sm:$0xf] %vm761_vm1, %v1293_v54  ;;  %v1057_v2 = vsel %vm826_vm2, %v977_v59, 0.0  ;;  %v1061_v25 = vsel %vm826_vm2, %v979_v0, 0.0  ;;  %v1316_v49 = vpack.c.bf16 %v1840_v12, %v1840_v12  ;;  %v1319_v54 = vpack.c.bf16 %v1846_v17, %v1846_v17 }
 0x100   :  { %v863_v4 = vadd.f32 %v862_v63, %v861_v62  ;;  %v1058_v7 = vadd.f32 %v1057_v2, %v1056_v61 }
 0x101   :  { %v1397_v8 = vpop.f32.mrb[20].mxu0  ;;  %802 = vst.msk [vmem:[%s2337_s2 + $0xa0] sm:$0xf] %vm761_vm1, %v1316_v49  ;;  %805 = vst.msk [vmem:[%s2337_s2 + $0xac] sm:$0xf] %vm761_vm1, %v1319_v54 }
 0x102   :  { %v1298_v14 = vpack.c.bf16 %v1397_v8, %v1397_v8  ;;  %v330_v16 = vpop.f32.mrb[21].mxu0  ;;  %v1060_v18 = vadd.f32 %v1059_v11, %v1058_v7  ;;  %v865_v20 = vadd.f32 %v864_v13, %v863_v4  ;;  %v1921_v24 = vpop.f32.mrb[16].mxu1  ;;  %v982_v35 = vmul.f32 %v1397_v8, %v1397_v8 }
 0x103   :  { %v1296_v19 = vpack.c.bf16 %v330_v16, %v330_v16  ;;  %v866_v21 = vsel %vm826_vm2, %v330_v16, 0.0  ;;  %v1398_v23 = vpop.f32.mrb[22].mxu0  ;;  %v980_v26 = vmul.f32 %v330_v16, %v330_v16  ;;  %v1928_v29 = vpop.f32.mrb[17].mxu1  ;;  %v870_v44 = vsel %vm826_vm2, %v1397_v8, 0.0 }
 0x104   :  { %784 = vst.msk [vmem:[%s2337_s2 + $0x58] sm:$0xf] %vm761_vm1, %v1298_v14  ;;  %v1299_v27 = vpack.c.bf16 %v1398_v23, %v1398_v23  ;;  %v333_v28 = vpop.f32.mrb[23].mxu0  ;;  %v867_v30 = vadd.f32 %v866_v21, %v865_v20  ;;  %v1062_v31 = vadd.f32 %v1061_v25, %v1060_v18  ;;  %v1934_v33 = vpop.f32.mrb[18].mxu1  ;;  %v983_v46 = vmul.f32 %v1398_v23, %v1398_v23 }
 0x105   :  { %782 = vst.msk [vmem:[%s2337_s2 + $0x50] sm:$0xf] %vm761_vm1, %v1296_v19  ;;  %v1297_v32 = vpack.c.bf16 %v333_v28, %v333_v28  ;;  %v1063_v36 = vsel %vm826_vm2, %v980_v26, 0.0  ;;  %v868_v37 = vsel %vm826_vm2, %v333_v28, 0.0  ;;  %v981_v38 = vmul.f32 %v333_v28, %v333_v28  ;;  %v1942_v40 = vpop.f32.mrb[19].mxu1 }
 0x106   :  { %785 = vst.msk [vmem:[%s2337_s2 + $0x5c] sm:$0xf] %vm761_vm1, %v1299_v27  ;;  %v1064_v41 = vadd.f32 %v1063_v36, %v1062_v31  ;;  %v869_v42 = vadd.f32 %v868_v37, %v867_v30  ;;  %v1067_v56 = vsel %vm826_vm2, %v982_v35, 0.0  ;;  %v872_v57 = vsel %vm826_vm2, %v1398_v23, 0.0 }
 0x107   :  { %783 = vst.msk [vmem:[%s2337_s2 + $0x54] sm:$0xf] %vm761_vm1, %v1297_v32  ;;  %v1065_v47 = vsel %vm826_vm2, %v981_v38, 0.0  ;;  %v1069_v4 = vsel %vm826_vm2, %v983_v46, 0.0  ;;  %v1317_v32 = vpack.c.bf16 %v1854_v22, %v1854_v22  ;;  %v1322_v38 = vpack.c.bf16 %v1877_v45, %v1877_v45 }
 0x108   :  { %v871_v50 = vadd.f32 %v870_v44, %v869_v42  ;;  %v1066_v52 = vadd.f32 %v1065_v47, %v1064_v41 }
 0x109   :  { %v1401_v53 = vpop.f32.mrb[24].mxu0  ;;  %803 = vst.msk [vmem:[%s2337_s2 + $0xa4] sm:$0xf] %vm761_vm1, %v1317_v32  ;;  %808 = vst.msk [vmem:[%s2337_s2 + $0xb8] sm:$0xf] %vm761_vm1, %v1322_v38 }
 0x10a   :  { %v1302_v58 = vpack.c.bf16 %v1401_v53, %v1401_v53  ;;  %v346_v59 = vpop.f32.mrb[25].mxu0  ;;  %v1068_v61 = vadd.f32 %v1067_v56, %v1066_v52  ;;  %v873_v63 = vadd.f32 %v872_v57, %v871_v50  ;;  %v1965_v3 = vpop.f32.mrb[20].mxu1  ;;  %v986_v19 = vmul.f32 %v1401_v53, %v1401_v53 }
 0x10b   :  { %v1300_v62 = vpack.c.bf16 %v346_v59, %v346_v59  ;;  %v874_v0 = vsel %vm826_vm2, %v346_v59, 0.0  ;;  %v1402_v2 = vpop.f32.mrb[26].mxu0  ;;  %v984_v7 = vmul.f32 %v346_v59, %v346_v59  ;;  %v1972_v11 = vpop.f32.mrb[21].mxu1  ;;  %v878_v28 = vsel %vm826_vm2, %v1401_v53, 0.0 }
 0x10c   :  { %788 = vst.msk [vmem:[%s2337_s2 + $0x68] sm:$0xf] %vm761_vm1, %v1302_v58  ;;  %v1303_v8 = vpack.c.bf16 %v1402_v2, %v1402_v2  ;;  %v349_v9 = vpop.f32.mrb[27].mxu0  ;;  %v875_v13 = vadd.f32 %v874_v0, %v873_v63  ;;  %v1070_v14 = vadd.f32 %v1069_v4, %v1068_v61  ;;  %v1978_v18 = vpop.f32.mrb[22].mxu1  ;;  %v987_v30 = vmul.f32 %v1402_v2, %v1402_v2 }
 0x10d   :  { %786 = vst.msk [vmem:[%s2337_s2 + $0x60] sm:$0xf] %vm761_vm1, %v1300_v62  ;;  %v1301_v16 = vpack.c.bf16 %v349_v9, %v349_v9  ;;  %v1071_v20 = vsel %vm826_vm2, %v984_v7, 0.0  ;;  %v876_v21 = vsel %vm826_vm2, %v349_v9, 0.0  ;;  %v985_v23 = vmul.f32 %v349_v9, %v349_v9  ;;  %v1986_v25 = vpop.f32.mrb[23].mxu1 }
 0x10e   :  { %789 = vst.msk [vmem:[%s2337_s2 + $0x6c] sm:$0xf] %vm761_vm1, %v1303_v8  ;;  %v1072_v26 = vadd.f32 %v1071_v20, %v1070_v14  ;;  %v877_v27 = vadd.f32 %v876_v21, %v875_v13  ;;  %v1075_v41 = vsel %vm826_vm2, %v986_v19, 0.0  ;;  %v880_v42 = vsel %vm826_vm2, %v1402_v2, 0.0 }
 0x10f   :  { %787 = vst.msk [vmem:[%s2337_s2 + $0x64] sm:$0xf] %vm761_vm1, %v1301_v16  ;;  %v1073_v31 = vsel %vm826_vm2, %v985_v23, 0.0  ;;  %v1077_v56 = vsel %vm826_vm2, %v987_v30, 0.0  ;;  %v992_v19 = vmul.f32 %v1746_v5, %v1746_v5  ;;  %v1323_v30 = vpack.c.bf16 %v1890_v55, %v1890_v55 }
 0x110   :  { %v879_v35 = vadd.f32 %v878_v28, %v877_v27  ;;  %v1074_v36 = vadd.f32 %v1073_v31, %v1072_v26  ;;  %v1320_v26 = vpack.c.bf16 %v1884_v51, %v1884_v51 }
 0x111   :  { %v1405_v37 = vpop.f32.mrb[28].mxu0  ;;  %809 = vst.msk [vmem:[%s2337_s2 + $0xbc] sm:$0xf] %vm761_vm1, %v1323_v30 }
 0x112   :  { %v1306_v44 = vpack.c.bf16 %v1405_v37, %v1405_v37  ;;  %v362_v46 = vpop.f32.mrb[29].mxu0  ;;  %v1076_v47 = vadd.f32 %v1075_v41, %v1074_v36  ;;  %v881_v50 = vadd.f32 %v880_v42, %v879_v35  ;;  %v2009_v54 = vpop.f32.mrb[24].mxu1  ;;  %v990_v4 = vmul.f32 %v1405_v37, %v1405_v37  ;;  %806 = vst.msk [vmem:[%s2337_s2 + $0xb0] sm:$0xf] %vm761_vm1, %v1320_v26 }
 0x113   :  { %v1304_v49 = vpack.c.bf16 %v362_v46, %v362_v46  ;;  %v882_v52 = vsel %vm826_vm2, %v362_v46, 0.0  ;;  %v1406_v53 = vpop.f32.mrb[30].mxu0  ;;  %v988_v57 = vmul.f32 %v362_v46, %v362_v46  ;;  %v2016_v61 = vpop.f32.mrb[25].mxu1  ;;  %v886_v20 = vsel %vm826_vm2, %v1405_v37, 0.0 }
 0x114   :  { %792 = vst.msk [vmem:[%s2337_s2 + $0x78] sm:$0xf] %vm761_vm1, %v1306_v44  ;;  %v1307_v58 = vpack.c.bf16 %v1406_v53, %v1406_v53  ;;  %v365_v59 = vpop.f32.mrb[31].mxu0  ;;  %v883_v62 = vadd.f32 %v882_v52, %v881_v50  ;;  %v1078_v63 = vadd.f32 %v1077_v56, %v1076_v47  ;;  %v2022_v2 = vpop.f32.mrb[26].mxu1  ;;  %v991_v21 = vmul.f32 %v1406_v53, %v1406_v53 }
 0x115   :  { %790 = vst.msk [vmem:[%s2337_s2 + $0x70] sm:$0xf] %vm761_vm1, %v1304_v49  ;;  %v1305_v0 = vpack.c.bf16 %v365_v59, %v365_v59  ;;  %v1079_v7 = vsel %vm826_vm2, %v988_v57, 0.0  ;;  %v884_v8 = vsel %vm826_vm2, %v365_v59, 0.0  ;;  %v989_v9 = vmul.f32 %v365_v59, %v365_v59  ;;  %v2030_v13 = vpop.f32.mrb[27].mxu1 }
 0x116   :  { %793 = vst.msk [vmem:[%s2337_s2 + $0x7c] sm:$0xf] %vm761_vm1, %v1307_v58  ;;  %v1080_v14 = vadd.f32 %v1079_v7, %v1078_v63  ;;  %v885_v16 = vadd.f32 %v884_v8, %v883_v62  ;;  %v1083_v31 = vsel %vm826_vm2, %v990_v4, 0.0  ;;  %v888_v32 = vsel %vm826_vm2, %v1406_v53, 0.0 }
 0x117   :  { %791 = vst.msk [vmem:[%s2337_s2 + $0x74] sm:$0xf] %vm761_vm1, %v1305_v0  ;;  %v1081_v23 = vsel %vm826_vm2, %v989_v9, 0.0  ;;  %v890_v35 = vsel %vm826_vm2, %v1746_v5, 0.0  ;;  %v1321_v36 = vpack.c.bf16 %v1898_v60, %v1898_v60  ;;  %v1085_v42 = vsel %vm826_vm2, %v991_v21, 0.0 }
 0x118   :  { %v887_v27 = vadd.f32 %v886_v20, %v885_v16  ;;  %v1082_v28 = vadd.f32 %v1081_v23, %v1080_v14  ;;  %v1087_v5 = vsel %vm826_vm2, %v992_v19, 0.0  ;;  %v993_v44 = vmul.f32 %v1762_v15, %v1762_v15 }
 0x119   :  { %807 = vst.msk [vmem:[%s2337_s2 + $0xb4] sm:$0xf] %vm761_vm1, %v1321_v36  ;;  %v1326_v46 = vpack.c.bf16 %v1921_v24, %v1921_v24  ;;  %v1324_v52 = vpack.c.bf16 %v1928_v29, %v1928_v29  ;;  %v994_v56 = vmul.f32 %v1740_v1, %v1740_v1  ;;  %v892_v57 = vsel %vm826_vm2, %v1762_v15, 0.0 }
 0x11a   :  { %v1084_v37 = vadd.f32 %v1083_v31, %v1082_v28  ;;  %v889_v38 = vadd.f32 %v888_v32, %v887_v27  ;;  %v2058_v41 = vpop.f32.mrb[28].mxu1  ;;  %v1327_v58 = vpack.c.bf16 %v1934_v33, %v1934_v33  ;;  %v894_v62 = vsel %vm826_vm2, %v1740_v1, 0.0 }
 0x11b   :  { %v2070_v47 = vpop.f32.mrb[29].mxu1  ;;  %812 = vst.msk [vmem:[%s2337_s2 + $0xc8] sm:$0xf] %vm761_vm1, %v1326_v46  ;;  %810 = vst.msk [vmem:[%s2337_s2 + $0xc0] sm:$0xf] %vm761_vm1, %v1324_v52  ;;  %v995_v15 = vmul.f32 %v1753_v10, %v1753_v10  ;;  %v1089_v4 = vsel %vm826_vm2, %v993_v44, 0.0  ;;  %v996_v7 = vmul.f32 %v1796_v39, %v1796_v39  ;;  %v1325_v1 = vpack.c.bf16 %v1942_v40, %v1942_v40 }
 0x11c   :  { %v891_v49 = vadd.f32 %v890_v35, %v889_v38  ;;  %v1086_v50 = vadd.f32 %v1085_v42, %v1084_v37  ;;  %v2074_v53 = vpop.f32.mrb[30].mxu1  ;;  %813 = vst.msk [vmem:[%s2337_s2 + $0xcc] sm:$0xf] %vm761_vm1, %v1327_v58  ;;  %v1330_v14 = vpack.c.bf16 %v1965_v3, %v1965_v3  ;;  %v1091_v16 = vsel %vm826_vm2, %v994_v56, 0.0 }
 0x11d   :  { %v2086_v59 = vpop.f32.mrb[31].mxu1  ;;  %v896_v19 = vsel %vm826_vm2, %v1753_v10, 0.0  ;;  %v898_v20 = vsel %vm826_vm2, %v1796_v39, 0.0  ;;  %811 = vst.msk [vmem:[%s2337_s2 + $0xc4] sm:$0xf] %vm761_vm1, %v1325_v1  ;;  %v1328_v21 = vpack.c.bf16 %v1972_v11, %v1972_v11  ;;  %v1093_v10 = vsel %vm826_vm2, %v995_v15, 0.0 }
 0x11e   :  { %v1088_v63 = vadd.f32 %v1087_v5, %v1086_v50  ;;  %v893_v0 = vadd.f32 %v892_v57, %v891_v49  ;;  %816 = vst.msk [vmem:[%s2337_s2 + $0xd8] sm:$0xf] %vm761_vm1, %v1330_v14  ;;  %v1095_v27 = vsel %vm826_vm2, %v996_v7, 0.0  ;;  %v997_v39 = vmul.f32 %v1810_v48, %v1810_v48 }
 0x11f   :  { %814 = vst.msk [vmem:[%s2337_s2 + $0xd0] sm:$0xf] %vm761_vm1, %v1328_v21  ;;  %v1331_v28 = vpack.c.bf16 %v1978_v18, %v1978_v18  ;;  %v1329_v32 = vpack.c.bf16 %v1986_v25, %v1986_v25  ;;  %v998_v35 = vmul.f32 %v1789_v34, %v1789_v34  ;;  %v900_v36 = vsel %vm826_vm2, %v1810_v48, 0.0 }
 0x120   :  { %v895_v8 = vadd.f32 %v894_v62, %v893_v0  ;;  %v1090_v9 = vadd.f32 %v1089_v4, %v1088_v63  ;;  %v1334_v37 = vpack.c.bf16 %v2009_v54, %v2009_v54  ;;  %v902_v38 = vsel %vm826_vm2, %v1789_v34, 0.0 }
 0x121   :  { %817 = vst.msk [vmem:[%s2337_s2 + $0xdc] sm:$0xf] %vm761_vm1, %v1331_v28  ;;  %815 = vst.msk [vmem:[%s2337_s2 + $0xd4] sm:$0xf] %vm761_vm1, %v1329_v32  ;;  %v999_v48 = vmul.f32 %v1802_v43, %v1802_v43  ;;  %v1097_v44 = vsel %vm826_vm2, %v997_v39, 0.0  ;;  %v1000_v46 = vmul.f32 %v1840_v12, %v1840_v12  ;;  %v1332_v34 = vpack.c.bf16 %v2016_v61, %v2016_v61 }
 0x122   :  { %v1092_v23 = vadd.f32 %v1091_v16, %v1090_v9  ;;  %v897_v26 = vadd.f32 %v896_v19, %v895_v8  ;;  %820 = vst.msk [vmem:[%s2337_s2 + $0xe8] sm:$0xf] %vm761_vm1, %v1334_v37  ;;  %v1335_v52 = vpack.c.bf16 %v2022_v2, %v2022_v2  ;;  %v1099_v56 = vsel %vm826_vm2, %v998_v35, 0.0 }
 0x123   :  { %v904_v57 = vsel %vm826_vm2, %v1802_v43, 0.0  ;;  %v906_v58 = vsel %vm826_vm2, %v1840_v12, 0.0  ;;  %818 = vst.msk [vmem:[%s2337_s2 + $0xe0] sm:$0xf] %vm761_vm1, %v1332_v34  ;;  %v1333_v62 = vpack.c.bf16 %v2030_v13, %v2030_v13  ;;  %v1101_v43 = vsel %vm826_vm2, %v999_v48, 0.0 }
 0x124   :  { %v899_v30 = vadd.f32 %v898_v20, %v897_v26  ;;  %v1094_v31 = vadd.f32 %v1093_v10, %v1092_v23  ;;  %821 = vst.msk [vmem:[%s2337_s2 + $0xec] sm:$0xf] %vm761_vm1, %v1335_v52  ;;  %v1103_v15 = vsel %vm826_vm2, %v1000_v46, 0.0  ;;  %v1001_v12 = vmul.f32 %v1854_v22, %v1854_v22 }
 0x125   :  { %819 = vst.msk [vmem:[%s2337_s2 + $0xe4] sm:$0xf] %vm761_vm1, %v1333_v62  ;;  %v1338_v4 = vpack.c.bf16 %v2058_v41, %v2058_v41  ;;  %v1336_v8 = vpack.c.bf16 %v2070_v47, %v2070_v47  ;;  %v1002_v9 = vmul.f32 %v1833_v6, %v1833_v6  ;;  %v908_v14 = vsel %vm826_vm2, %v1854_v22, 0.0 }
 0x126   :  { %v1096_v42 = vadd.f32 %v1095_v27, %v1094_v31  ;;  %v901_v5 = vadd.f32 %v900_v36, %v899_v30  ;;  %v1339_v16 = vpack.c.bf16 %v2074_v53, %v2074_v53  ;;  %v910_v19 = vsel %vm826_vm2, %v1833_v6, 0.0 }
 0x127   :  { %824 = vst.msk [vmem:[%s2337_s2 + $0xf8] sm:$0xf] %vm761_vm1, %v1338_v4  ;;  %822 = vst.msk [vmem:[%s2337_s2 + $0xf0] sm:$0xf] %vm761_vm1, %v1336_v8  ;;  %v1003_v22 = vmul.f32 %v1846_v17, %v1846_v17  ;;  %v1105_v23 = vsel %vm826_vm2, %v1001_v12, 0.0  ;;  %v1004_v26 = vmul.f32 %v1884_v51, %v1884_v51  ;;  %v1337_v6 = vpack.c.bf16 %v2086_v59, %v2086_v59 }
 0x128   :  { %v903_v49 = vadd.f32 %v902_v38, %v901_v5  ;;  %v1098_v50 = vadd.f32 %v1097_v44, %v1096_v42  ;;  %825 = vst.msk [vmem:[%s2337_s2 + $0xfc] sm:$0xf] %vm761_vm1, %v1339_v16  ;;  %v1107_v39 = vsel %vm826_vm2, %v1002_v9, 0.0  ;;  %v912_v28 = vsel %vm826_vm2, %v1846_v17, 0.0 }
 0x129   :  { %v914_v30 = vsel %vm826_vm2, %v1884_v51, 0.0  ;;  %823 = vst.msk [vmem:[%s2337_s2 + $0xf4] sm:$0xf] %vm761_vm1, %v1337_v6  ;;  %v1109_v35 = vsel %vm826_vm2, %v1003_v22, 0.0  ;;  %v1111_v36 = vsel %vm826_vm2, %v1004_v26, 0.0  ;;  %v1005_v37 = vmul.f32 %v1898_v60, %v1898_v60  ;;  %s1467_s2 = smov [#allocation2]  }
 0x12a   :  { %v1100_v63 = vadd.f32 %v1099_v56, %v1098_v50  ;;  %v905_v0 = vadd.f32 %v904_v57, %v903_v49  ;;  %v1006_v17 = vmul.f32 %v1877_v45, %v1877_v45  ;;  %v916_v51 = vsel %vm826_vm2, %v1898_v60, 0.0  ;;  %s1169_s13 = sshll.u32 %s1467_s2, 4  ;;  %s1170_s13 = int_to_ptr.vmem [resolvable:$true] %s1169_s13 }
 0x12b   :  { %v918_v44 = vsel %vm826_vm2, %v1877_v45, 0.0  ;;  %v1007_v46 = vmul.f32 %v1890_v55, %v1890_v55  ;;  %v1113_v34 = vsel %vm826_vm2, %v1005_v37, 0.0  ;;  %v1008_v49 = vmul.f32 %v1928_v29, %v1928_v29  ;;  %s1443_s14 = scalar_lea.vmem %s1170_s13, 32  ;;  %p1448_p1 = scmp.lt.s32.totalorder %s1170_s13, %s1170_s13 }
 0x12c   :  { %v907_v7 = vadd.f32 %v906_v58, %v905_v0  ;;  %v1102_v1 = vadd.f32 %v1101_v43, %v1100_v63  ;;  %v1115_v56 = vsel %vm826_vm2, %v1006_v17, 0.0  ;;  %v920_v60 = vsel %vm826_vm2, %v1890_v55, 0.0  ;;  %p1444_p0 = scmp.ne.s32.totalorder %s1170_s13, %s1443_s14  ;;  %p1449_p2 = scmp.lt.s32.totalorder %s1443_s14, %s1443_s14 }
 0x12d   :  { %v922_v57 = vsel %vm826_vm2, %v1928_v29, 0.0  ;;  %v1117_v62 = vsel %vm826_vm2, %v1007_v46, 0.0  ;;  %v1119_v63 = vsel %vm826_vm2, %v1008_v49, 0.0  ;;  %v1009_v0 = vmul.f32 %v1942_v40, %v1942_v40 }
 0x12e   :  { %v1104_v20 = vadd.f32 %v1103_v15, %v1102_v1  ;;  %v909_v21 = vadd.f32 %v908_v14, %v907_v7  ;;  %v1010_v12 = vmul.f32 %v1921_v24, %v1921_v24  ;;  %v924_v55 = vsel %vm826_vm2, %v1942_v40, 0.0  ;;  %p1450_p3 = por %p1449_p2, %p1448_p1 }
 0x12f   :  { %v926_v29 = vsel %vm826_vm2, %v1921_v24, 0.0  ;;  %v1011_v1 = vmul.f32 %v1934_v33, %v1934_v33  ;;  %v1121_v8 = vsel %vm826_vm2, %v1009_v0, 0.0  ;;  %v1012_v9 = vmul.f32 %v1972_v11, %v1972_v11 }
 0x130   :  { %v911_v10 = vadd.f32 %v910_v19, %v909_v21  ;;  %v1106_v27 = vadd.f32 %v1105_v23, %v1104_v20  ;;  %v1123_v19 = vsel %vm826_vm2, %v1010_v12, 0.0  ;;  %v928_v40 = vsel %vm826_vm2, %v1934_v33, 0.0  ;;  %p1451_p4 = pnand %p1450_p3, %p1444_p0 }
 0x131   :  { %v930_v20 = vsel %vm826_vm2, %v1972_v11, 0.0  ;;  %v1125_v22 = vsel %vm826_vm2, %v1011_v1, 0.0  ;;  %v1127_v23 = vsel %vm826_vm2, %v1012_v9, 0.0  ;;  %v1013_v26 = vmul.f32 %v1986_v25, %v1986_v25 }
 0x132   :  { %v1108_v31 = vadd.f32 %v1107_v39, %v1106_v27  ;;  %v913_v32 = vadd.f32 %v912_v28, %v911_v10  ;;  %v1014_v27 = vmul.f32 %v1965_v3, %v1965_v3  ;;  %v932_v33 = vsel %vm826_vm2, %v1986_v25, 0.0 }
 0x133   :  { %v934_v11 = vsel %vm826_vm2, %v1965_v3, 0.0  ;;  %v936_v25 = vsel %vm826_vm2, %v1978_v18, 0.0  ;;  %v1018_v46 = vmul.f32 %v2009_v54, %v2009_v54 }
 0x134   :  { %v915_v38 = vadd.f32 %v914_v30, %v913_v32  ;;  %v1110_v42 = vadd.f32 %v1109_v35, %v1108_v31  ;;  %v1015_v30 = vmul.f32 %v1978_v18, %v1978_v18  ;;  %v1129_v31 = vsel %vm826_vm2, %v1013_v26, 0.0 }
 0x135   :  { %v1016_v32 = vmul.f32 %v2016_v61, %v2016_v61  ;;  %v1131_v37 = vsel %vm826_vm2, %v1014_v27, 0.0  ;;  %v940_v18 = vsel %vm826_vm2, %v2030_v13, 0.0 }
 0x136   :  { %v1112_v5 = vadd.f32 %v1111_v36, %v1110_v42  ;;  %v917_v48 = vadd.f32 %v916_v51, %v915_v38  ;;  %v938_v38 = vsel %vm826_vm2, %v2016_v61, 0.0  ;;  %v1133_v17 = vsel %vm826_vm2, %v1015_v30, 0.0 }
 0x137   :  { %v1135_v51 = vsel %vm826_vm2, %v1016_v32, 0.0  ;;  %v942_v61 = vsel %vm826_vm2, %v2009_v54, 0.0 }
 0x138   :  { %v919_v50 = vadd.f32 %v918_v44, %v917_v48  ;;  %v1114_v52 = vadd.f32 %v1113_v34, %v1112_v5  ;;  %v1017_v5 = vmul.f32 %v2030_v13, %v2030_v13  ;;  %v944_v13 = vsel %vm826_vm2, %v2022_v2, 0.0 }
 0x13a   :  { %v1116_v58 = vadd.f32 %v1115_v56, %v1114_v52  ;;  %v921_v45 = vadd.f32 %v920_v60, %v919_v50  ;;  %v1019_v50 = vmul.f32 %v2022_v2, %v2022_v2  ;;  %v1137_v52 = vsel %vm826_vm2, %v1017_v5, 0.0 }
 0x13b   :  { %v1020_v56 = vmul.f32 %v2070_v47, %v2070_v47  ;;  %v948_v2 = vsel %vm826_vm2, %v2086_v59, 0.0 }
 0x13c   :  { %v923_v43 = vadd.f32 %v922_v57, %v921_v45  ;;  %v1118_v15 = vadd.f32 %v1117_v62, %v1116_v58  ;;  %v1139_v58 = vsel %vm826_vm2, %v1018_v46, 0.0  ;;  %v946_v45 = vsel %vm826_vm2, %v2070_v47, 0.0 }
 0x13d   :  { %v1143_v0 = vsel %vm826_vm2, %v1020_v56, 0.0  ;;  %v950_v47 = vsel %vm826_vm2, %v2058_v41, 0.0 }
 0x13e   :  { %v1120_v4 = vadd.f32 %v1119_v63, %v1118_v15  ;;  %v925_v7 = vadd.f32 %v924_v55, %v923_v43  ;;  %v1141_v63 = vsel %vm826_vm2, %v1019_v50, 0.0  ;;  %v1021_v43 = vmul.f32 %v2086_v59, %v2086_v59 }
 0x13f   :  { %v1022_v55 = vmul.f32 %v2058_v41, %v2058_v41 }
 0x140   :  { %v927_v14 = vadd.f32 %v926_v29, %v925_v7  ;;  %v1122_v16 = vadd.f32 %v1121_v8, %v1120_v4  ;;  %v1023_v29 = vmul.f32 %v2074_v53, %v2074_v53  ;;  %v1145_v1 = vsel %vm826_vm2, %v1021_v43, 0.0 }
 0x142   :  { %v1124_v21 = vadd.f32 %v1123_v19, %v1122_v16  ;;  %v929_v24 = vadd.f32 %v928_v40, %v927_v14  ;;  %v1147_v14 = vsel %vm826_vm2, %v1022_v55, 0.0  ;;  %v952_v16 = vsel %vm826_vm2, %v2074_v53, 0.0 }
 0x143   :  { %v1149_v59 = vsel %vm826_vm2, %v1023_v29, 0.0 }
 0x144   :  { %v931_v6 = vadd.f32 %v930_v20, %v929_v24  ;;  %v1126_v10 = vadd.f32 %v1125_v22, %v1124_v21 }
 0x146   :  { %v1128_v39 = vadd.f32 %v1127_v23, %v1126_v10  ;;  %v933_v28 = vadd.f32 %v932_v33, %v931_v6 }
 0x148   :  { %v935_v35 = vadd.f32 %v934_v11, %v933_v28  ;;  %v1130_v36 = vadd.f32 %v1129_v31, %v1128_v39 }
 0x14a   :  { %v1132_v42 = vadd.f32 %v1131_v37, %v1130_v36  ;;  %v937_v3 = vadd.f32 %v936_v25, %v935_v35 }
 0x14c   :  { %v939_v48 = vadd.f32 %v938_v38, %v937_v3  ;;  %v1134_v44 = vadd.f32 %v1133_v17, %v1132_v42 }
 0x14e   :  { %v1136_v34 = vadd.f32 %v1135_v51, %v1134_v44  ;;  %v941_v49 = vadd.f32 %v940_v18, %v939_v48 }
 0x150   :  { %v943_v60 = vadd.f32 %v942_v61, %v941_v49  ;;  %v1138_v57 = vadd.f32 %v1137_v52, %v1136_v34 }
 0x152   :  { %v1140_v62 = vadd.f32 %v1139_v58, %v1138_v57  ;;  %v945_v54 = vadd.f32 %v944_v13, %v943_v60 }
 0x154   :  { %v947_v15 = vadd.f32 %v946_v45, %v945_v54  ;;  %v1142_v12 = vadd.f32 %v1141_v63, %v1140_v62 }
 0x156   :  { %v1144_v4 = vadd.f32 %v1143_v0, %v1142_v12  ;;  %v949_v7 = vadd.f32 %v948_v2, %v947_v15 }
 0x158   :  { %v951_v8 = vadd.f32 %v950_v47, %v949_v7  ;;  %v1146_v9 = vadd.f32 %v1145_v1, %v1144_v4 }
 0x15a   :  { %v953_v19 = vadd.f32 %v952_v16, %v951_v8  ;;  %v1148_v40 = vadd.f32 %v1147_v14, %v1146_v9 }
 0x15c   :  { %v954_v20 = vrot.slane %v953_v19, 4  ;;  %v1150_v21 = vadd.f32 %v1149_v59, %v1148_v40 }
 0x15e   :  { %v955_v24 = vadd.f32 %v954_v20, %v953_v19  ;;  %v1151_v41 = vrot.slane %v1150_v21, 4 }
 0x160   :  { %v956_v22 = vrot.slane %v955_v24, 2  ;;  %v1152_v23 = vadd.f32 %v1151_v41, %v1150_v21 }
 0x162   :  { %v957_v26 = vadd.f32 %v956_v22, %v955_v24  ;;  %v1153_v6 = vrot.slane %v1152_v23, 2 }
 0x164   :  { %v958_v10 = vrot.slane %v957_v26, 1  ;;  %v1154_v27 = vadd.f32 %v1153_v6, %v1152_v23 }
 0x166   :  { %v1155_v33 = vrot.slane %v1154_v27, 1  ;;  %v959_v39 = vadd.f32 %v958_v10, %v957_v26 }
 0x168   :  { %v1156_v53 = vadd.f32 %v1155_v33, %v1154_v27 }
 0x16a   :  { %v1158_v28 = vsel %vm1157_vm3, %v959_v39, %v1156_v53 }
 0x16b   :  { %1160 = vst.msk [vmem:[#allocation2] sm:$0x3] %vm1159_vm4, %v1158_v28 }
 0x16c   :  { %1454 = shalt.err (!%p1451_p4)
}
 0x16d   :  { %s1455_s17 = scalar_lea.hbm %s2338_s3, 32 }
 0x16e   :  { %p1456_p5 = scmp.ne.s32.totalorder %s2338_s3, %s1455_s17  ;;  %p1459_p6 = scmp.lt.u32.totalorder %s1455_s17, %s2338_s3 }
 0x170   :  { %p1461_p7 = pnand %p1459_p6, %p1456_p5 }
 0x172   :  { %1464 = shalt.err (!%p1461_p7)
}
 0x173   :  { %1172 = dma.vmem_to_hbm [thread:$0]  %s1170_s13, 32, %s2338_s3, [#allocation3]  }
 0x174   :  { %1465 = dma.done.wait [#allocation3], 32  }
 0x175   :  { %1466 = vsyncadd [#allocation3], 4294967264 }
 0x176   :  { %1178 = vsyncpa [#allocation3], 1 }

</bundles_post_ra>
